<compile_context>
chip_gen: v7x
topology: tpu7x:2x2x1
jax: 0.10.0
libtpu: 0.0.40
codegen_flags: <defaults>
</compile_context>

<pallas_src>
import math

import jax
import jax.numpy as jnp
from jax import lax
from jax.experimental import pallas as pl
from jax.experimental.pallas import tpu as pltpu

BN_EPS = 1e-5  # nn.BatchNorm1d default


def _make_fused_kernel(depth, C0, growth, K, L, NL):
    """Build the fused DenseBlock kernel body (fully unrolled over layers)."""
    PAD = (K - 1) // 2
    inv_nl = 1.0 / float(NL)

    def kernel(*refs):
        x_ref, gb_ref = refs[0], refs[1]
        w_refs = refs[2:2 + depth]
        o_ref = refs[2 + depth]          # (C_total, NL) resident feature slab
        stk_ref = refs[3 + depth]        # (K*c_in_max, NL) im2col scratch

        # --- Conv boundary masks: built once, shared by all layers/taps. ---
        pos = lax.broadcasted_iota(jnp.int32, (1, NL), 1) % L
        tap_mask = []
        for k in range(K):
            d = k - PAD
            if d == 0:
                tap_mask.append(None)
            else:
                valid = jnp.logical_and(pos + d >= 0, pos + d < L)
                tap_mask.append(valid.astype(jnp.float32))   # (1, NL)

        # --- DenseNet concat done in place on the output slab. ---
        o_ref[0:C0, :] = x_ref[...]

        c_in = C0
        for l in range(depth):
            x = o_ref[0:c_in, :]                              # (c_in, NL)
            g = gb_ref[0:c_in, 2 * l:2 * l + 1]               # (c_in, 1)
            b = gb_ref[0:c_in, 2 * l + 1:2 * l + 2]           # (c_in, 1)

            # BatchNorm1d (training-mode batch stats, biased variance) as
            # relu(x*scale + shift); Sum(x) and Sum(x^2) are independent.
            mean = jnp.sum(x, axis=1, keepdims=True) * inv_nl
            ex2 = jnp.sum(x * x, axis=1, keepdims=True) * inv_nl
            var = ex2 - mean * mean
            scale = lax.rsqrt(var + BN_EPS) * g
            shift = b - mean * scale
            a = jnp.maximum(x * scale + shift, 0.0)

            # im2col: K lane-rolled copies stacked along sublanes into VMEM
            # scratch; lanes whose source crosses a batch boundary / the
            # 'same' padding halo are zeroed with the precomputed masks.
            for k in range(K):
                d = k - PAD
                if d == 0:
                    piece = a
                else:
                    piece = pltpu.roll(a, (-d) % NL, axis=1) * tap_mask[k]
                stk_ref[k * c_in:(k + 1) * c_in, :] = piece

            # Whole Conv1d(K, 'same', bias=False) as ONE MXU matmul with a
            # K*c_in-deep contraction and a lane-dense (NL-wide) output.
            o_ref[c_in:c_in + growth, :] = jnp.dot(
                w_refs[l][...], stk_ref[0:K * c_in, :],
                preferred_element_type=jnp.float32).astype(o_ref.dtype)

            c_in += growth

    return kernel


def pack_dense_block_params(params, input_channels):
    """One-time (eager) packing of [(gamma, beta, w), ...] for the kernel."""
    depth = len(params)
    growth, _, K = params[0][2].shape
    C_total = input_channels + depth * growth

    gb = jnp.zeros((C_total, 2 * depth), jnp.float32)
    ws = []
    c_in = input_channels
    for l, (gamma, beta, w) in enumerate(params):
        gb = gb.at[0:c_in, 2 * l].set(gamma.astype(jnp.float32))
        gb = gb.at[0:c_in, 2 * l + 1].set(beta.astype(jnp.float32))
        # (c_out, c_in, K) -> (c_out, K*c_in), tap-major to match im2col rows.
        ws.append(jnp.transpose(w, (0, 2, 1))
                  .reshape(growth, K * c_in).astype(jnp.float32))
        c_in += growth
    return gb, tuple(ws)


@jax.jit
def dense_block_fused(x, gb, ws):
    """Fused DenseBlock forward. x: (N, C0, L); gb/ws from pack_..._params."""
    N, C0, L = x.shape
    depth = len(ws)
    growth = ws[0].shape[0]
    K = ws[0].shape[1] // C0
    NL = N * L
    C_total = C0 + depth * growth
    c_in_last = C0 + (depth - 1) * growth

    # Alignment assumptions of this kernel (hold for the demo sizes).
    assert NL % 128 == 0, "N*L must be lane (128) aligned"
    assert C0 % 8 == 0 and growth % 8 == 0, "channel blocks must be 8-aligned"

    # (N, C, L) -> slab (C, N*L): channels on sublanes, batch*length on lanes.
    slab = jnp.transpose(x, (1, 0, 2)).reshape(C0, NL).astype(jnp.float32)

    kernel = _make_fused_kernel(depth, C0, growth, K, L, NL)

    in_specs = [
        pl.BlockSpec((C0, NL), lambda i: (0, 0)),               # input slab
        pl.BlockSpec((C_total, 2 * depth), lambda i: (0, 0)),   # gamma/beta
    ] + [pl.BlockSpec(w.shape, lambda i: (0, 0)) for w in ws]   # conv weights

    out = pl.pallas_call(
        kernel,
        out_shape=jax.ShapeDtypeStruct((C_total, NL), jnp.float32),
        grid=(1,),
        in_specs=in_specs,
        out_specs=pl.BlockSpec((C_total, NL), lambda i: (0, 0)),
        scratch_shapes=[pltpu.VMEM((K * c_in_last, NL), jnp.float32)],
        compiler_params=pltpu.CompilerParams(
            dimension_semantics=("arbitrary",)),
    )(slab, gb, *ws)

    # Slab -> (N, C_total, L)
    return jnp.transpose(out.reshape(C_total, N, L), (1, 0, 2))


def dense_block_ref(x, params, eps=BN_EPS):
    """Pure-JAX reference (no Pallas) for correctness checking."""
    for gamma, beta, w in params:
        mean = jnp.mean(x, axis=(0, 2))
        var = jnp.mean((x - mean[None, :, None]) ** 2, axis=(0, 2))
        a = (x - mean[None, :, None]) / jnp.sqrt(var + eps)[None, :, None]
        a = a * gamma[None, :, None] + beta[None, :, None]
        a = jnp.maximum(a, 0.0)
        pad = (w.shape[-1] - 1) // 2
        y = lax.conv_general_dilated(
            a, w, window_strides=(1,), padding=[(pad, pad)],
            dimension_numbers=("NCH", "OIH", "NCH"))
        x = jnp.concatenate([x, y], axis=1)
    return x


if __name__ == "__main__":
    # DenseBlock(depth=3, input_channels=8, growth_rate=8, kernel_size=9,
    #            dropout=0, bottlenek=False) on input (N=2, C=8, L=64).
    # N*L = 128 -> one full lane vector; channel counts are 8-aligned.
    depth, C0, growth, K = 3, 8, 8, 9
    N, L = 2, 64

    key = jax.random.PRNGKey(0)
    params = []
    c_in = C0
    for _ in range(depth):
        key, kw, kg, kb = jax.random.split(key, 4)
        w = jax.random.normal(kw, (growth, c_in, K), jnp.float32) / math.sqrt(c_in * K)
        gamma = 1.0 + 0.1 * jax.random.normal(kg, (c_in,), jnp.float32)
        beta = 0.1 * jax.random.normal(kb, (c_in,), jnp.float32)
        params.append((gamma, beta, w))
        c_in += growth

    key, kx = jax.random.split(key)
    x = jax.random.normal(kx, (N, C0, L), jnp.float32)

    gb, ws = pack_dense_block_params(params, C0)          # eager, once
    out = jax.block_until_ready(dense_block_fused(x, gb, ws))
    assert out.shape == (N, C0 + depth * growth, L)

    ref = dense_block_ref(x, params)
    max_err = float(jnp.max(jnp.abs(out - ref)))
    assert max_err < 1e-3, f"max abs error {max_err}"

    print("KERNEL_OK")
</pallas_src>

<mosaic_0001>
module attributes {stable_mosaic.version = 11 : i64} {
  func.func @kernel(%arg0: i32, %arg1: memref<8x128xf32, #tpu.memory_space<vmem>>, %arg2: memref<32x6xf32, #tpu.memory_space<vmem>>, %arg3: memref<8x72xf32, #tpu.memory_space<vmem>>, %arg4: memref<8x144xf32, #tpu.memory_space<vmem>>, %arg5: memref<8x216xf32, #tpu.memory_space<vmem>>, %arg6: memref<32x128xf32, #tpu.memory_space<vmem>>, %arg7: memref<216x128xf32, #tpu.memory_space<vmem>>) attributes {dimension_semantics = [#tpu.dimension_semantics<arbitrary>], iteration_bounds = array<i64: 1>, scalar_prefetch = 0 : i64, scratch_operands = 1 : i64, tpu.core_type = #tpu.core_type<tc>, window_params = [{pipeline_mode = #tpu.pipeline_mode<synchronous>, transform_indices = @transform_0, window_bounds = array<i64: 8, 128>}, {pipeline_mode = #tpu.pipeline_mode<synchronous>, transform_indices = @transform_1, window_bounds = array<i64: 32, 6>}, {pipeline_mode = #tpu.pipeline_mode<synchronous>, transform_indices = @transform_2, window_bounds = array<i64: 8, 72>}, {pipeline_mode = #tpu.pipeline_mode<synchronous>, transform_indices = @transform_3, window_bounds = array<i64: 8, 144>}, {pipeline_mode = #tpu.pipeline_mode<synchronous>, transform_indices = @transform_4, window_bounds = array<i64: 8, 216>}, {pipeline_mode = #tpu.pipeline_mode<synchronous>, transform_indices = @transform_5, window_bounds = array<i64: 32, 128>}]} {
    %0 = tpu.iota {dimensions = array<i32: 1>} : vector<1x128xi32>
    %c64_i32 = arith.constant 64 : i32
    %c0_i32 = arith.constant 0 : i32
    %1 = arith.cmpi eq, %c64_i32, %c0_i32 : i32
    %c1_i32 = arith.constant 1 : i32
    %2 = arith.select %1, %c1_i32, %c64_i32 : i32
    %3 = vector.broadcast %2 : i32 to vector<1x128xi32>
    %4 = arith.remsi %0, %3 : vector<1x128xi32>
    %c0_i32_0 = arith.constant 0 : i32
    %5 = vector.broadcast %c0_i32_0 : i32 to vector<1x128xi32>
    %6 = arith.cmpi ne, %4, %5 : vector<1x128xi32>
    %c0_i32_1 = arith.constant 0 : i32
    %7 = vector.broadcast %c0_i32_1 : i32 to vector<1x128xi32>
    %8 = arith.cmpi slt, %4, %7 : vector<1x128xi32>
    %c0_i32_2 = arith.constant 0 : i32
    %9 = arith.cmpi slt, %2, %c0_i32_2 : i32
    %10 = vector.broadcast %9 : i1 to vector<1x128xi1>
    %11 = vector.broadcast %10 : vector<1x128xi1> to vector<1x128xi1>
    %12 = arith.xori %8, %11 : vector<1x128xi1>
    %13 = arith.andi %12, %6 : vector<1x128xi1>
    %14 = vector.broadcast %2 : i32 to vector<1x128xi32>
    %15 = arith.addi %4, %14 : vector<1x128xi32>
    %16 = arith.select %13, %15, %4 : vector<1x128xi1>, vector<1x128xi32>
    %c-4_i32 = arith.constant -4 : i32
    %17 = vector.broadcast %c-4_i32 : i32 to vector<1x128xi32>
    %18 = arith.addi %16, %17 : vector<1x128xi32>
    %c0_i32_3 = arith.constant 0 : i32
    %19 = vector.broadcast %c0_i32_3 : i32 to vector<1x128xi32>
    %20 = arith.cmpi sge, %18, %19 : vector<1x128xi32>
    %c-4_i32_4 = arith.constant -4 : i32
    %21 = vector.broadcast %c-4_i32_4 : i32 to vector<1x128xi32>
    %22 = arith.addi %16, %21 : vector<1x128xi32>
    %c64_i32_5 = arith.constant 64 : i32
    %23 = vector.broadcast %c64_i32_5 : i32 to vector<1x128xi32>
    %24 = arith.cmpi slt, %22, %23 : vector<1x128xi32>
    %25 = arith.andi %20, %24 : vector<1x128xi1>
    %26 = arith.extui %25 : vector<1x128xi1> to vector<1x128xi32>
    %27 = arith.sitofp %26 : vector<1x128xi32> to vector<1x128xf32>
    %c-3_i32 = arith.constant -3 : i32
    %28 = vector.broadcast %c-3_i32 : i32 to vector<1x128xi32>
    %29 = arith.addi %16, %28 : vector<1x128xi32>
    %c0_i32_6 = arith.constant 0 : i32
    %30 = vector.broadcast %c0_i32_6 : i32 to vector<1x128xi32>
    %31 = arith.cmpi sge, %29, %30 : vector<1x128xi32>
    %c-3_i32_7 = arith.constant -3 : i32
    %32 = vector.broadcast %c-3_i32_7 : i32 to vector<1x128xi32>
    %33 = arith.addi %16, %32 : vector<1x128xi32>
    %c64_i32_8 = arith.constant 64 : i32
    %34 = vector.broadcast %c64_i32_8 : i32 to vector<1x128xi32>
    %35 = arith.cmpi slt, %33, %34 : vector<1x128xi32>
    %36 = arith.andi %31, %35 : vector<1x128xi1>
    %37 = arith.extui %36 : vector<1x128xi1> to vector<1x128xi32>
    %38 = arith.sitofp %37 : vector<1x128xi32> to vector<1x128xf32>
    %c-2_i32 = arith.constant -2 : i32
    %39 = vector.broadcast %c-2_i32 : i32 to vector<1x128xi32>
    %40 = arith.addi %16, %39 : vector<1x128xi32>
    %c0_i32_9 = arith.constant 0 : i32
    %41 = vector.broadcast %c0_i32_9 : i32 to vector<1x128xi32>
    %42 = arith.cmpi sge, %40, %41 : vector<1x128xi32>
    %c-2_i32_10 = arith.constant -2 : i32
    %43 = vector.broadcast %c-2_i32_10 : i32 to vector<1x128xi32>
    %44 = arith.addi %16, %43 : vector<1x128xi32>
    %c64_i32_11 = arith.constant 64 : i32
    %45 = vector.broadcast %c64_i32_11 : i32 to vector<1x128xi32>
    %46 = arith.cmpi slt, %44, %45 : vector<1x128xi32>
    %47 = arith.andi %42, %46 : vector<1x128xi1>
    %48 = arith.extui %47 : vector<1x128xi1> to vector<1x128xi32>
    %49 = arith.sitofp %48 : vector<1x128xi32> to vector<1x128xf32>
    %c-1_i32 = arith.constant -1 : i32
    %50 = vector.broadcast %c-1_i32 : i32 to vector<1x128xi32>
    %51 = arith.addi %16, %50 : vector<1x128xi32>
    %c0_i32_12 = arith.constant 0 : i32
    %52 = vector.broadcast %c0_i32_12 : i32 to vector<1x128xi32>
    %53 = arith.cmpi sge, %51, %52 : vector<1x128xi32>
    %c-1_i32_13 = arith.constant -1 : i32
    %54 = vector.broadcast %c-1_i32_13 : i32 to vector<1x128xi32>
    %55 = arith.addi %16, %54 : vector<1x128xi32>
    %c64_i32_14 = arith.constant 64 : i32
    %56 = vector.broadcast %c64_i32_14 : i32 to vector<1x128xi32>
    %57 = arith.cmpi slt, %55, %56 : vector<1x128xi32>
    %58 = arith.andi %53, %57 : vector<1x128xi1>
    %59 = arith.extui %58 : vector<1x128xi1> to vector<1x128xi32>
    %60 = arith.sitofp %59 : vector<1x128xi32> to vector<1x128xf32>
    %c1_i32_15 = arith.constant 1 : i32
    %61 = vector.broadcast %c1_i32_15 : i32 to vector<1x128xi32>
    %62 = arith.addi %16, %61 : vector<1x128xi32>
    %c0_i32_16 = arith.constant 0 : i32
    %63 = vector.broadcast %c0_i32_16 : i32 to vector<1x128xi32>
    %64 = arith.cmpi sge, %62, %63 : vector<1x128xi32>
    %c1_i32_17 = arith.constant 1 : i32
    %65 = vector.broadcast %c1_i32_17 : i32 to vector<1x128xi32>
    %66 = arith.addi %16, %65 : vector<1x128xi32>
    %c64_i32_18 = arith.constant 64 : i32
    %67 = vector.broadcast %c64_i32_18 : i32 to vector<1x128xi32>
    %68 = arith.cmpi slt, %66, %67 : vector<1x128xi32>
    %69 = arith.andi %64, %68 : vector<1x128xi1>
    %70 = arith.extui %69 : vector<1x128xi1> to vector<1x128xi32>
    %71 = arith.sitofp %70 : vector<1x128xi32> to vector<1x128xf32>
    %c2_i32 = arith.constant 2 : i32
    %72 = vector.broadcast %c2_i32 : i32 to vector<1x128xi32>
    %73 = arith.addi %16, %72 : vector<1x128xi32>
    %c0_i32_19 = arith.constant 0 : i32
    %74 = vector.broadcast %c0_i32_19 : i32 to vector<1x128xi32>
    %75 = arith.cmpi sge, %73, %74 : vector<1x128xi32>
    %c2_i32_20 = arith.constant 2 : i32
    %76 = vector.broadcast %c2_i32_20 : i32 to vector<1x128xi32>
    %77 = arith.addi %16, %76 : vector<1x128xi32>
    %c64_i32_21 = arith.constant 64 : i32
    %78 = vector.broadcast %c64_i32_21 : i32 to vector<1x128xi32>
    %79 = arith.cmpi slt, %77, %78 : vector<1x128xi32>
    %80 = arith.andi %75, %79 : vector<1x128xi1>
    %81 = arith.extui %80 : vector<1x128xi1> to vector<1x128xi32>
    %82 = arith.sitofp %81 : vector<1x128xi32> to vector<1x128xf32>
    %c3_i32 = arith.constant 3 : i32
    %83 = vector.broadcast %c3_i32 : i32 to vector<1x128xi32>
    %84 = arith.addi %16, %83 : vector<1x128xi32>
    %c0_i32_22 = arith.constant 0 : i32
    %85 = vector.broadcast %c0_i32_22 : i32 to vector<1x128xi32>
    %86 = arith.cmpi sge, %84, %85 : vector<1x128xi32>
    %c3_i32_23 = arith.constant 3 : i32
    %87 = vector.broadcast %c3_i32_23 : i32 to vector<1x128xi32>
    %88 = arith.addi %16, %87 : vector<1x128xi32>
    %c64_i32_24 = arith.constant 64 : i32
    %89 = vector.broadcast %c64_i32_24 : i32 to vector<1x128xi32>
    %90 = arith.cmpi slt, %88, %89 : vector<1x128xi32>
    %91 = arith.andi %86, %90 : vector<1x128xi1>
    %92 = arith.extui %91 : vector<1x128xi1> to vector<1x128xi32>
    %93 = arith.sitofp %92 : vector<1x128xi32> to vector<1x128xf32>
    %c4_i32 = arith.constant 4 : i32
    %94 = vector.broadcast %c4_i32 : i32 to vector<1x128xi32>
    %95 = arith.addi %16, %94 : vector<1x128xi32>
    %c0_i32_25 = arith.constant 0 : i32
    %96 = vector.broadcast %c0_i32_25 : i32 to vector<1x128xi32>
    %97 = arith.cmpi sge, %95, %96 : vector<1x128xi32>
    %c4_i32_26 = arith.constant 4 : i32
    %98 = vector.broadcast %c4_i32_26 : i32 to vector<1x128xi32>
    %99 = arith.addi %16, %98 : vector<1x128xi32>
    %c64_i32_27 = arith.constant 64 : i32
    %100 = vector.broadcast %c64_i32_27 : i32 to vector<1x128xi32>
    %101 = arith.cmpi slt, %99, %100 : vector<1x128xi32>
    %102 = arith.andi %97, %101 : vector<1x128xi1>
    %103 = arith.extui %102 : vector<1x128xi1> to vector<1x128xi32>
    %104 = arith.sitofp %103 : vector<1x128xi32> to vector<1x128xf32>
    %c0 = arith.constant 0 : index
    %c0_28 = arith.constant 0 : index
    %105 = vector.load %arg1[%c0, %c0_28] : memref<8x128xf32, #tpu.memory_space<vmem>>, vector<8x128xf32>
    %c0_29 = arith.constant 0 : index
    %c0_30 = arith.constant 0 : index
    %106 = vector.load %arg6[%c0_29, %c0_30] : memref<32x128xf32, #tpu.memory_space<vmem>>, vector<8x128xf32>
    tpu.vector_store %arg6[%c0_29, %c0_30], %105 {strides = array<i32>} : memref<32x128xf32, #tpu.memory_space<vmem>>, vector<8x128xf32>,
    %c0_31 = arith.constant 0 : index
    %c0_32 = arith.constant 0 : index
    %107 = vector.load %arg6[%c0_31, %c0_32] : memref<32x128xf32, #tpu.memory_space<vmem>>, vector<8x128xf32>
    %c0_33 = arith.constant 0 : index
    %c0_34 = arith.constant 0 : index
    %108 = vector.load %arg2[%c0_33, %c0_34] : memref<32x6xf32, #tpu.memory_space<vmem>>, vector<8x1xf32>
    %c0_35 = arith.constant 0 : index
    %c1 = arith.constant 1 : index
    %109 = vector.load %arg2[%c0_35, %c1] : memref<32x6xf32, #tpu.memory_space<vmem>>, vector<8x1xf32>
    %cst = arith.constant dense<0.000000e+00> : vector<8xf32>
    %110 = vector.multi_reduction <add>, %107, %cst [1] : vector<8x128xf32> to vector<8xf32>
    %111 = vector.shape_cast %110 : vector<8xf32> to vector<8x1xf32>
    %cst_36 = arith.constant 7.812500e-03 : f32
    %112 = vector.broadcast %cst_36 : f32 to vector<8x1xf32>
    %113 = arith.mulf %111, %112 : vector<8x1xf32>
    %114 = arith.mulf %107, %107 : vector<8x128xf32>
    %cst_37 = arith.constant dense<0.000000e+00> : vector<8xf32>
    %115 = vector.multi_reduction <add>, %114, %cst_37 [1] : vector<8x128xf32> to vector<8xf32>
    %116 = vector.shape_cast %115 : vector<8xf32> to vector<8x1xf32>
    %cst_38 = arith.constant 7.812500e-03 : f32
    %117 = vector.broadcast %cst_38 : f32 to vector<8x1xf32>
    %118 = arith.mulf %116, %117 : vector<8x1xf32>
    %119 = arith.mulf %113, %113 : vector<8x1xf32>
    %120 = arith.subf %118, %119 : vector<8x1xf32>
    %cst_39 = arith.constant 9.99999974E-6 : f32
    %121 = vector.broadcast %cst_39 : f32 to vector<8x1xf32>
    %122 = arith.addf %120, %121 : vector<8x1xf32>
    %123 = math.rsqrt %122 : vector<8x1xf32>
    %124 = arith.mulf %123, %108 : vector<8x1xf32>
    %125 = arith.mulf %113, %124 : vector<8x1xf32>
    %126 = arith.subf %109, %125 : vector<8x1xf32>
    %127 = vector.broadcast %124 : vector<8x1xf32> to vector<8x128xf32>
    %128 = arith.mulf %107, %127 : vector<8x128xf32>
    %129 = vector.broadcast %126 : vector<8x1xf32> to vector<8x128xf32>
    %130 = arith.addf %128, %129 : vector<8x128xf32>
    %cst_40 = arith.constant 0.000000e+00 : f32
    %131 = vector.broadcast %cst_40 : f32 to vector<8x128xf32>
    %132 = arith.maximumf %130, %131 : vector<8x128xf32>
    %c4_i32_41 = arith.constant 4 : i32
    %133 = tpu.dynamic_rotate %132 by %c4_i32_41 dim 1 : vector<8x128xf32>, i32 -> vector<8x128xf32>
    %134 = vector.broadcast %27 : vector<1x128xf32> to vector<8x128xf32>
    %135 = arith.mulf %133, %134 : vector<8x128xf32>
    %c0_42 = arith.constant 0 : index
    %c0_43 = arith.constant 0 : index
    %136 = vector.load %arg7[%c0_42, %c0_43] : memref<216x128xf32, #tpu.memory_space<vmem>>, vector<8x128xf32>
    tpu.vector_store %arg7[%c0_42, %c0_43], %135 {strides = array<i32>} : memref<216x128xf32, #tpu.memory_space<vmem>>, vector<8x128xf32>,
    %c3_i32_44 = arith.constant 3 : i32
    %137 = tpu.dynamic_rotate %132 by %c3_i32_44 dim 1 : vector<8x128xf32>, i32 -> vector<8x128xf32>
    %138 = vector.broadcast %38 : vector<1x128xf32> to vector<8x128xf32>
    %139 = arith.mulf %137, %138 : vector<8x128xf32>
    %c8 = arith.constant 8 : index
    %c0_45 = arith.constant 0 : index
    %140 = vector.load %arg7[%c8, %c0_45] : memref<216x128xf32, #tpu.memory_space<vmem>>, vector<8x128xf32>
    tpu.vector_store %arg7[%c8, %c0_45], %139 {strides = array<i32>} : memref<216x128xf32, #tpu.memory_space<vmem>>, vector<8x128xf32>,
    %c2_i32_46 = arith.constant 2 : i32
    %141 = tpu.dynamic_rotate %132 by %c2_i32_46 dim 1 : vector<8x128xf32>, i32 -> vector<8x128xf32>
    %142 = vector.broadcast %49 : vector<1x128xf32> to vector<8x128xf32>
    %143 = arith.mulf %141, %142 : vector<8x128xf32>
    %c16 = arith.constant 16 : index
    %c0_47 = arith.constant 0 : index
    %144 = vector.load %arg7[%c16, %c0_47] : memref<216x128xf32, #tpu.memory_space<vmem>>, vector<8x128xf32>
    tpu.vector_store %arg7[%c16, %c0_47], %143 {strides = array<i32>} : memref<216x128xf32, #tpu.memory_space<vmem>>, vector<8x128xf32>,
    %c1_i32_48 = arith.constant 1 : i32
    %145 = tpu.dynamic_rotate %132 by %c1_i32_48 dim 1 : vector<8x128xf32>, i32 -> vector<8x128xf32>
    %146 = vector.broadcast %60 : vector<1x128xf32> to vector<8x128xf32>
    %147 = arith.mulf %145, %146 : vector<8x128xf32>
    %c24 = arith.constant 24 : index
    %c0_49 = arith.constant 0 : index
    %148 = vector.load %arg7[%c24, %c0_49] : memref<216x128xf32, #tpu.memory_space<vmem>>, vector<8x128xf32>
    tpu.vector_store %arg7[%c24, %c0_49], %147 {strides = array<i32>} : memref<216x128xf32, #tpu.memory_space<vmem>>, vector<8x128xf32>,
    %c32 = arith.constant 32 : index
    %c0_50 = arith.constant 0 : index
    %149 = vector.load %arg7[%c32, %c0_50] : memref<216x128xf32, #tpu.memory_space<vmem>>, vector<8x128xf32>
    tpu.vector_store %arg7[%c32, %c0_50], %132 {strides = array<i32>} : memref<216x128xf32, #tpu.memory_space<vmem>>, vector<8x128xf32>,
    %c127_i32 = arith.constant 127 : i32
    %150 = tpu.dynamic_rotate %132 by %c127_i32 dim 1 : vector<8x128xf32>, i32 -> vector<8x128xf32>
    %151 = vector.broadcast %71 : vector<1x128xf32> to vector<8x128xf32>
    %152 = arith.mulf %150, %151 : vector<8x128xf32>
    %c40 = arith.constant 40 : index
    %c0_51 = arith.constant 0 : index
    %153 = vector.load %arg7[%c40, %c0_51] : memref<216x128xf32, #tpu.memory_space<vmem>>, vector<8x128xf32>
    tpu.vector_store %arg7[%c40, %c0_51], %152 {strides = array<i32>} : memref<216x128xf32, #tpu.memory_space<vmem>>, vector<8x128xf32>,
    %c126_i32 = arith.constant 126 : i32
    %154 = tpu.dynamic_rotate %132 by %c126_i32 dim 1 : vector<8x128xf32>, i32 -> vector<8x128xf32>
    %155 = vector.broadcast %82 : vector<1x128xf32> to vector<8x128xf32>
    %156 = arith.mulf %154, %155 : vector<8x128xf32>
    %c48 = arith.constant 48 : index
    %c0_52 = arith.constant 0 : index
    %157 = vector.load %arg7[%c48, %c0_52] : memref<216x128xf32, #tpu.memory_space<vmem>>, vector<8x128xf32>
    tpu.vector_store %arg7[%c48, %c0_52], %156 {strides = array<i32>} : memref<216x128xf32, #tpu.memory_space<vmem>>, vector<8x128xf32>,
    %c125_i32 = arith.constant 125 : i32
    %158 = tpu.dynamic_rotate %132 by %c125_i32 dim 1 : vector<8x128xf32>, i32 -> vector<8x128xf32>
    %159 = vector.broadcast %93 : vector<1x128xf32> to vector<8x128xf32>
    %160 = arith.mulf %158, %159 : vector<8x128xf32>
    %c56 = arith.constant 56 : index
    %c0_53 = arith.constant 0 : index
    %161 = vector.load %arg7[%c56, %c0_53] : memref<216x128xf32, #tpu.memory_space<vmem>>, vector<8x128xf32>
    tpu.vector_store %arg7[%c56, %c0_53], %160 {strides = array<i32>} : memref<216x128xf32, #tpu.memory_space<vmem>>, vector<8x128xf32>,
    %c124_i32 = arith.constant 124 : i32
    %162 = tpu.dynamic_rotate %132 by %c124_i32 dim 1 : vector<8x128xf32>, i32 -> vector<8x128xf32>
    %163 = vector.broadcast %104 : vector<1x128xf32> to vector<8x128xf32>
    %164 = arith.mulf %162, %163 : vector<8x128xf32>
    %c64 = arith.constant 64 : index
    %c0_54 = arith.constant 0 : index
    %165 = vector.load %arg7[%c64, %c0_54] : memref<216x128xf32, #tpu.memory_space<vmem>>, vector<8x128xf32>
    tpu.vector_store %arg7[%c64, %c0_54], %164 {strides = array<i32>} : memref<216x128xf32, #tpu.memory_space<vmem>>, vector<8x128xf32>,
    %c0_55 = arith.constant 0 : index
    %c0_56 = arith.constant 0 : index
    %166 = vector.load %arg3[%c0_55, %c0_56] : memref<8x72xf32, #tpu.memory_space<vmem>>, vector<8x72xf32>
    %c0_57 = arith.constant 0 : index
    %c0_58 = arith.constant 0 : index
    %167 = vector.load %arg7[%c0_57, %c0_58] : memref<216x128xf32, #tpu.memory_space<vmem>>, vector<72x128xf32>
    %cst_59 = arith.constant dense<0.000000e+00> : vector<8x128xf32>
    %168 = tpu.matmul %166, %167, %cst_59 {dimension_numbers = #tpu.dot_dimension_numbers<[1], [0], [0], [1], [0, 0, 1, 1], [], []>} : vector<8x72xf32>, vector<72x128xf32>, vector<8x128xf32> -> vector<8x128xf32>
    %c8_60 = arith.constant 8 : index
    %c0_61 = arith.constant 0 : index
    %169 = vector.load %arg6[%c8_60, %c0_61] : memref<32x128xf32, #tpu.memory_space<vmem>>, vector<8x128xf32>
    tpu.vector_store %arg6[%c8_60, %c0_61], %168 {strides = array<i32>} : memref<32x128xf32, #tpu.memory_space<vmem>>, vector<8x128xf32>,
    %c0_62 = arith.constant 0 : index
    %c0_63 = arith.constant 0 : index
    %170 = vector.load %arg6[%c0_62, %c0_63] : memref<32x128xf32, #tpu.memory_space<vmem>>, vector<16x128xf32>
    %c0_64 = arith.constant 0 : index
    %c2 = arith.constant 2 : index
    %171 = vector.load %arg2[%c0_64, %c2] : memref<32x6xf32, #tpu.memory_space<vmem>>, vector<16x1xf32>
    %c0_65 = arith.constant 0 : index
    %c3 = arith.constant 3 : index
    %172 = vector.load %arg2[%c0_65, %c3] : memref<32x6xf32, #tpu.memory_space<vmem>>, vector<16x1xf32>
    %cst_66 = arith.constant dense<0.000000e+00> : vector<16xf32>
    %173 = vector.multi_reduction <add>, %170, %cst_66 [1] : vector<16x128xf32> to vector<16xf32>
    %174 = vector.shape_cast %173 : vector<16xf32> to vector<16x1xf32>
    %cst_67 = arith.constant 7.812500e-03 : f32
    %175 = vector.broadcast %cst_67 : f32 to vector<16x1xf32>
    %176 = arith.mulf %174, %175 : vector<16x1xf32>
    %177 = arith.mulf %170, %170 : vector<16x128xf32>
    %cst_68 = arith.constant dense<0.000000e+00> : vector<16xf32>
    %178 = vector.multi_reduction <add>, %177, %cst_68 [1] : vector<16x128xf32> to vector<16xf32>
    %179 = vector.shape_cast %178 : vector<16xf32> to vector<16x1xf32>
    %cst_69 = arith.constant 7.812500e-03 : f32
    %180 = vector.broadcast %cst_69 : f32 to vector<16x1xf32>
    %181 = arith.mulf %179, %180 : vector<16x1xf32>
    %182 = arith.mulf %176, %176 : vector<16x1xf32>
    %183 = arith.subf %181, %182 : vector<16x1xf32>
    %cst_70 = arith.constant 9.99999974E-6 : f32
    %184 = vector.broadcast %cst_70 : f32 to vector<16x1xf32>
    %185 = arith.addf %183, %184 : vector<16x1xf32>
    %186 = math.rsqrt %185 : vector<16x1xf32>
    %187 = arith.mulf %186, %171 : vector<16x1xf32>
    %188 = arith.mulf %176, %187 : vector<16x1xf32>
    %189 = arith.subf %172, %188 : vector<16x1xf32>
    %190 = vector.broadcast %187 : vector<16x1xf32> to vector<16x128xf32>
    %191 = arith.mulf %170, %190 : vector<16x128xf32>
    %192 = vector.broadcast %189 : vector<16x1xf32> to vector<16x128xf32>
    %193 = arith.addf %191, %192 : vector<16x128xf32>
    %cst_71 = arith.constant 0.000000e+00 : f32
    %194 = vector.broadcast %cst_71 : f32 to vector<16x128xf32>
    %195 = arith.maximumf %193, %194 : vector<16x128xf32>
    %c4_i32_72 = arith.constant 4 : i32
    %196 = tpu.dynamic_rotate %195 by %c4_i32_72 dim 1 : vector<16x128xf32>, i32 -> vector<16x128xf32>
    %197 = vector.broadcast %27 : vector<1x128xf32> to vector<16x128xf32>
    %198 = arith.mulf %196, %197 : vector<16x128xf32>
    %c0_73 = arith.constant 0 : index
    %c0_74 = arith.constant 0 : index
    %199 = vector.load %arg7[%c0_73, %c0_74] : memref<216x128xf32, #tpu.memory_space<vmem>>, vector<16x128xf32>
    tpu.vector_store %arg7[%c0_73, %c0_74], %198 {strides = array<i32>} : memref<216x128xf32, #tpu.memory_space<vmem>>, vector<16x128xf32>,
    %c3_i32_75 = arith.constant 3 : i32
    %200 = tpu.dynamic_rotate %195 by %c3_i32_75 dim 1 : vector<16x128xf32>, i32 -> vector<16x128xf32>
    %201 = vector.broadcast %38 : vector<1x128xf32> to vector<16x128xf32>
    %202 = arith.mulf %200, %201 : vector<16x128xf32>
    %c16_76 = arith.constant 16 : index
    %c0_77 = arith.constant 0 : index
    %203 = vector.load %arg7[%c16_76, %c0_77] : memref<216x128xf32, #tpu.memory_space<vmem>>, vector<16x128xf32>
    tpu.vector_store %arg7[%c16_76, %c0_77], %202 {strides = array<i32>} : memref<216x128xf32, #tpu.memory_space<vmem>>, vector<16x128xf32>,
    %c2_i32_78 = arith.constant 2 : i32
    %204 = tpu.dynamic_rotate %195 by %c2_i32_78 dim 1 : vector<16x128xf32>, i32 -> vector<16x128xf32>
    %205 = vector.broadcast %49 : vector<1x128xf32> to vector<16x128xf32>
    %206 = arith.mulf %204, %205 : vector<16x128xf32>
    %c32_79 = arith.constant 32 : index
    %c0_80 = arith.constant 0 : index
    %207 = vector.load %arg7[%c32_79, %c0_80] : memref<216x128xf32, #tpu.memory_space<vmem>>, vector<16x128xf32>
    tpu.vector_store %arg7[%c32_79, %c0_80], %206 {strides = array<i32>} : memref<216x128xf32, #tpu.memory_space<vmem>>, vector<16x128xf32>,
    %c1_i32_81 = arith.constant 1 : i32
    %208 = tpu.dynamic_rotate %195 by %c1_i32_81 dim 1 : vector<16x128xf32>, i32 -> vector<16x128xf32>
    %209 = vector.broadcast %60 : vector<1x128xf32> to vector<16x128xf32>
    %210 = arith.mulf %208, %209 : vector<16x128xf32>
    %c48_82 = arith.constant 48 : index
    %c0_83 = arith.constant 0 : index
    %211 = vector.load %arg7[%c48_82, %c0_83] : memref<216x128xf32, #tpu.memory_space<vmem>>, vector<16x128xf32>
    tpu.vector_store %arg7[%c48_82, %c0_83], %210 {strides = array<i32>} : memref<216x128xf32, #tpu.memory_space<vmem>>, vector<16x128xf32>,
    %c64_84 = arith.constant 64 : index
    %c0_85 = arith.constant 0 : index
    %212 = vector.load %arg7[%c64_84, %c0_85] : memref<216x128xf32, #tpu.memory_space<vmem>>, vector<16x128xf32>
    tpu.vector_store %arg7[%c64_84, %c0_85], %195 {strides = array<i32>} : memref<216x128xf32, #tpu.memory_space<vmem>>, vector<16x128xf32>,
    %c127_i32_86 = arith.constant 127 : i32
    %213 = tpu.dynamic_rotate %195 by %c127_i32_86 dim 1 : vector<16x128xf32>, i32 -> vector<16x128xf32>
    %214 = vector.broadcast %71 : vector<1x128xf32> to vector<16x128xf32>
    %215 = arith.mulf %213, %214 : vector<16x128xf32>
    %c80 = arith.constant 80 : index
    %c0_87 = arith.constant 0 : index
    %216 = vector.load %arg7[%c80, %c0_87] : memref<216x128xf32, #tpu.memory_space<vmem>>, vector<16x128xf32>
    tpu.vector_store %arg7[%c80, %c0_87], %215 {strides = array<i32>} : memref<216x128xf32, #tpu.memory_space<vmem>>, vector<16x128xf32>,
    %c126_i32_88 = arith.constant 126 : i32
    %217 = tpu.dynamic_rotate %195 by %c126_i32_88 dim 1 : vector<16x128xf32>, i32 -> vector<16x128xf32>
    %218 = vector.broadcast %82 : vector<1x128xf32> to vector<16x128xf32>
    %219 = arith.mulf %217, %218 : vector<16x128xf32>
    %c96 = arith.constant 96 : index
    %c0_89 = arith.constant 0 : index
    %220 = vector.load %arg7[%c96, %c0_89] : memref<216x128xf32, #tpu.memory_space<vmem>>, vector<16x128xf32>
    tpu.vector_store %arg7[%c96, %c0_89], %219 {strides = array<i32>} : memref<216x128xf32, #tpu.memory_space<vmem>>, vector<16x128xf32>,
    %c125_i32_90 = arith.constant 125 : i32
    %221 = tpu.dynamic_rotate %195 by %c125_i32_90 dim 1 : vector<16x128xf32>, i32 -> vector<16x128xf32>
    %222 = vector.broadcast %93 : vector<1x128xf32> to vector<16x128xf32>
    %223 = arith.mulf %221, %222 : vector<16x128xf32>
    %c112 = arith.constant 112 : index
    %c0_91 = arith.constant 0 : index
    %224 = vector.load %arg7[%c112, %c0_91] : memref<216x128xf32, #tpu.memory_space<vmem>>, vector<16x128xf32>
    tpu.vector_store %arg7[%c112, %c0_91], %223 {strides = array<i32>} : memref<216x128xf32, #tpu.memory_space<vmem>>, vector<16x128xf32>,
    %c124_i32_92 = arith.constant 124 : i32
    %225 = tpu.dynamic_rotate %195 by %c124_i32_92 dim 1 : vector<16x128xf32>, i32 -> vector<16x128xf32>
    %226 = vector.broadcast %104 : vector<1x128xf32> to vector<16x128xf32>
    %227 = arith.mulf %225, %226 : vector<16x128xf32>
    %c128 = arith.constant 128 : index
    %c0_93 = arith.constant 0 : index
    %228 = vector.load %arg7[%c128, %c0_93] : memref<216x128xf32, #tpu.memory_space<vmem>>, vector<16x128xf32>
    tpu.vector_store %arg7[%c128, %c0_93], %227 {strides = array<i32>} : memref<216x128xf32, #tpu.memory_space<vmem>>, vector<16x128xf32>,
    %c0_94 = arith.constant 0 : index
    %c0_95 = arith.constant 0 : index
    %229 = vector.load %arg4[%c0_94, %c0_95] : memref<8x144xf32, #tpu.memory_space<vmem>>, vector<8x144xf32>
    %c0_96 = arith.constant 0 : index
    %c0_97 = arith.constant 0 : index
    %230 = vector.load %arg7[%c0_96, %c0_97] : memref<216x128xf32, #tpu.memory_space<vmem>>, vector<144x128xf32>
    %cst_98 = arith.constant dense<0.000000e+00> : vector<8x128xf32>
    %231 = tpu.matmul %229, %230, %cst_98 {dimension_numbers = #tpu.dot_dimension_numbers<[1], [0], [0], [1], [0, 0, 1, 1], [], []>} : vector<8x144xf32>, vector<144x128xf32>, vector<8x128xf32> -> vector<8x128xf32>
    %c16_99 = arith.constant 16 : index
    %c0_100 = arith.constant 0 : index
    %232 = vector.load %arg6[%c16_99, %c0_100] : memref<32x128xf32, #tpu.memory_space<vmem>>, vector<8x128xf32>
    tpu.vector_store %arg6[%c16_99, %c0_100], %231 {strides = array<i32>} : memref<32x128xf32, #tpu.memory_space<vmem>>, vector<8x128xf32>,
    %c0_101 = arith.constant 0 : index
    %c0_102 = arith.constant 0 : index
    %233 = vector.load %arg6[%c0_101, %c0_102] : memref<32x128xf32, #tpu.memory_space<vmem>>, vector<24x128xf32>
    %c0_103 = arith.constant 0 : index
    %c4 = arith.constant 4 : index
    %234 = vector.load %arg2[%c0_103, %c4] : memref<32x6xf32, #tpu.memory_space<vmem>>, vector<24x1xf32>
    %c0_104 = arith.constant 0 : index
    %c5 = arith.constant 5 : index
    %235 = vector.load %arg2[%c0_104, %c5] : memref<32x6xf32, #tpu.memory_space<vmem>>, vector<24x1xf32>
    %cst_105 = arith.constant dense<0.000000e+00> : vector<24xf32>
    %236 = vector.multi_reduction <add>, %233, %cst_105 [1] : vector<24x128xf32> to vector<24xf32>
    %237 = vector.shape_cast %236 : vector<24xf32> to vector<24x1xf32>
    %cst_106 = arith.constant 7.812500e-03 : f32
    %238 = vector.broadcast %cst_106 : f32 to vector<24x1xf32>
    %239 = arith.mulf %237, %238 : vector<24x1xf32>
    %240 = arith.mulf %233, %233 : vector<24x128xf32>
    %cst_107 = arith.constant dense<0.000000e+00> : vector<24xf32>
    %241 = vector.multi_reduction <add>, %240, %cst_107 [1] : vector<24x128xf32> to vector<24xf32>
    %242 = vector.shape_cast %241 : vector<24xf32> to vector<24x1xf32>
    %cst_108 = arith.constant 7.812500e-03 : f32
    %243 = vector.broadcast %cst_108 : f32 to vector<24x1xf32>
    %244 = arith.mulf %242, %243 : vector<24x1xf32>
    %245 = arith.mulf %239, %239 : vector<24x1xf32>
    %246 = arith.subf %244, %245 : vector<24x1xf32>
    %cst_109 = arith.constant 9.99999974E-6 : f32
    %247 = vector.broadcast %cst_109 : f32 to vector<24x1xf32>
    %248 = arith.addf %246, %247 : vector<24x1xf32>
    %249 = math.rsqrt %248 : vector<24x1xf32>
    %250 = arith.mulf %249, %234 : vector<24x1xf32>
    %251 = arith.mulf %239, %250 : vector<24x1xf32>
    %252 = arith.subf %235, %251 : vector<24x1xf32>
    %253 = vector.broadcast %250 : vector<24x1xf32> to vector<24x128xf32>
    %254 = arith.mulf %233, %253 : vector<24x128xf32>
    %255 = vector.broadcast %252 : vector<24x1xf32> to vector<24x128xf32>
    %256 = arith.addf %254, %255 : vector<24x128xf32>
    %cst_110 = arith.constant 0.000000e+00 : f32
    %257 = vector.broadcast %cst_110 : f32 to vector<24x128xf32>
    %258 = arith.maximumf %256, %257 : vector<24x128xf32>
    %c4_i32_111 = arith.constant 4 : i32
    %259 = tpu.dynamic_rotate %258 by %c4_i32_111 dim 1 : vector<24x128xf32>, i32 -> vector<24x128xf32>
    %260 = vector.broadcast %27 : vector<1x128xf32> to vector<24x128xf32>
    %261 = arith.mulf %259, %260 : vector<24x128xf32>
    %c0_112 = arith.constant 0 : index
    %c0_113 = arith.constant 0 : index
    %262 = vector.load %arg7[%c0_112, %c0_113] : memref<216x128xf32, #tpu.memory_space<vmem>>, vector<24x128xf32>
    tpu.vector_store %arg7[%c0_112, %c0_113], %261 {strides = array<i32>} : memref<216x128xf32, #tpu.memory_space<vmem>>, vector<24x128xf32>,
    %c3_i32_114 = arith.constant 3 : i32
    %263 = tpu.dynamic_rotate %258 by %c3_i32_114 dim 1 : vector<24x128xf32>, i32 -> vector<24x128xf32>
    %264 = vector.broadcast %38 : vector<1x128xf32> to vector<24x128xf32>
    %265 = arith.mulf %263, %264 : vector<24x128xf32>
    %c24_115 = arith.constant 24 : index
    %c0_116 = arith.constant 0 : index
    %266 = vector.load %arg7[%c24_115, %c0_116] : memref<216x128xf32, #tpu.memory_space<vmem>>, vector<24x128xf32>
    tpu.vector_store %arg7[%c24_115, %c0_116], %265 {strides = array<i32>} : memref<216x128xf32, #tpu.memory_space<vmem>>, vector<24x128xf32>,
    %c2_i32_117 = arith.constant 2 : i32
    %267 = tpu.dynamic_rotate %258 by %c2_i32_117 dim 1 : vector<24x128xf32>, i32 -> vector<24x128xf32>
    %268 = vector.broadcast %49 : vector<1x128xf32> to vector<24x128xf32>
    %269 = arith.mulf %267, %268 : vector<24x128xf32>
    %c48_118 = arith.constant 48 : index
    %c0_119 = arith.constant 0 : index
    %270 = vector.load %arg7[%c48_118, %c0_119] : memref<216x128xf32, #tpu.memory_space<vmem>>, vector<24x128xf32>
    tpu.vector_store %arg7[%c48_118, %c0_119], %269 {strides = array<i32>} : memref<216x128xf32, #tpu.memory_space<vmem>>, vector<24x128xf32>,
    %c1_i32_120 = arith.constant 1 : i32
    %271 = tpu.dynamic_rotate %258 by %c1_i32_120 dim 1 : vector<24x128xf32>, i32 -> vector<24x128xf32>
    %272 = vector.broadcast %60 : vector<1x128xf32> to vector<24x128xf32>
    %273 = arith.mulf %271, %272 : vector<24x128xf32>
    %c72 = arith.constant 72 : index
    %c0_121 = arith.constant 0 : index
    %274 = vector.load %arg7[%c72, %c0_121] : memref<216x128xf32, #tpu.memory_space<vmem>>, vector<24x128xf32>
    tpu.vector_store %arg7[%c72, %c0_121], %273 {strides = array<i32>} : memref<216x128xf32, #tpu.memory_space<vmem>>, vector<24x128xf32>,
    %c96_122 = arith.constant 96 : index
    %c0_123 = arith.constant 0 : index
    %275 = vector.load %arg7[%c96_122, %c0_123] : memref<216x128xf32, #tpu.memory_space<vmem>>, vector<24x128xf32>
    tpu.vector_store %arg7[%c96_122, %c0_123], %258 {strides = array<i32>} : memref<216x128xf32, #tpu.memory_space<vmem>>, vector<24x128xf32>,
    %c127_i32_124 = arith.constant 127 : i32
    %276 = tpu.dynamic_rotate %258 by %c127_i32_124 dim 1 : vector<24x128xf32>, i32 -> vector<24x128xf32>
    %277 = vector.broadcast %71 : vector<1x128xf32> to vector<24x128xf32>
    %278 = arith.mulf %276, %277 : vector<24x128xf32>
    %c120 = arith.constant 120 : index
    %c0_125 = arith.constant 0 : index
    %279 = vector.load %arg7[%c120, %c0_125] : memref<216x128xf32, #tpu.memory_space<vmem>>, vector<24x128xf32>
    tpu.vector_store %arg7[%c120, %c0_125], %278 {strides = array<i32>} : memref<216x128xf32, #tpu.memory_space<vmem>>, vector<24x128xf32>,
    %c126_i32_126 = arith.constant 126 : i32
    %280 = tpu.dynamic_rotate %258 by %c126_i32_126 dim 1 : vector<24x128xf32>, i32 -> vector<24x128xf32>
    %281 = vector.broadcast %82 : vector<1x128xf32> to vector<24x128xf32>
    %282 = arith.mulf %280, %281 : vector<24x128xf32>
    %c144 = arith.constant 144 : index
    %c0_127 = arith.constant 0 : index
    %283 = vector.load %arg7[%c144, %c0_127] : memref<216x128xf32, #tpu.memory_space<vmem>>, vector<24x128xf32>
    tpu.vector_store %arg7[%c144, %c0_127], %282 {strides = array<i32>} : memref<216x128xf32, #tpu.memory_space<vmem>>, vector<24x128xf32>,
    %c125_i32_128 = arith.constant 125 : i32
    %284 = tpu.dynamic_rotate %258 by %c125_i32_128 dim 1 : vector<24x128xf32>, i32 -> vector<24x128xf32>
    %285 = vector.broadcast %93 : vector<1x128xf32> to vector<24x128xf32>
    %286 = arith.mulf %284, %285 : vector<24x128xf32>
    %c168 = arith.constant 168 : index
    %c0_129 = arith.constant 0 : index
    %287 = vector.load %arg7[%c168, %c0_129] : memref<216x128xf32, #tpu.memory_space<vmem>>, vector<24x128xf32>
    tpu.vector_store %arg7[%c168, %c0_129], %286 {strides = array<i32>} : memref<216x128xf32, #tpu.memory_space<vmem>>, vector<24x128xf32>,
    %c124_i32_130 = arith.constant 124 : i32
    %288 = tpu.dynamic_rotate %258 by %c124_i32_130 dim 1 : vector<24x128xf32>, i32 -> vector<24x128xf32>
    %289 = vector.broadcast %104 : vector<1x128xf32> to vector<24x128xf32>
    %290 = arith.mulf %288, %289 : vector<24x128xf32>
    %c192 = arith.constant 192 : index
    %c0_131 = arith.constant 0 : index
    %291 = vector.load %arg7[%c192, %c0_131] : memref<216x128xf32, #tpu.memory_space<vmem>>, vector<24x128xf32>
    tpu.vector_store %arg7[%c192, %c0_131], %290 {strides = array<i32>} : memref<216x128xf32, #tpu.memory_space<vmem>>, vector<24x128xf32>,
    %c0_132 = arith.constant 0 : index
    %c0_133 = arith.constant 0 : index
    %292 = vector.load %arg5[%c0_132, %c0_133] : memref<8x216xf32, #tpu.memory_space<vmem>>, vector<8x216xf32>
    %c0_134 = arith.constant 0 : index
    %c0_135 = arith.constant 0 : index
    %293 = vector.load %arg7[%c0_134, %c0_135] : memref<216x128xf32, #tpu.memory_space<vmem>>, vector<216x128xf32>
    %cst_136 = arith.constant dense<0.000000e+00> : vector<8x128xf32>
    %294 = tpu.matmul %292, %293, %cst_136 {dimension_numbers = #tpu.dot_dimension_numbers<[1], [0], [0], [1], [0, 0, 1, 1], [], []>} : vector<8x216xf32>, vector<216x128xf32>, vector<8x128xf32> -> vector<8x128xf32>
    %c24_137 = arith.constant 24 : index
    %c0_138 = arith.constant 0 : index
    %295 = vector.load %arg6[%c24_137, %c0_138] : memref<32x128xf32, #tpu.memory_space<vmem>>, vector<8x128xf32>
    tpu.vector_store %arg6[%c24_137, %c0_138], %294 {strides = array<i32>} : memref<32x128xf32, #tpu.memory_space<vmem>>, vector<8x128xf32>,
    return
  }
  func.func @transform_0(%arg0: i32) -> (i32, i32) {
    %c0_i32 = arith.constant 0 : i32
    %c0_i32_0 = arith.constant 0 : i32
    %c0_i32_1 = arith.constant 0 : i32
    return %c0_i32, %c0_i32_0 : i32, i32
  }
  func.func @transform_1(%arg0: i32) -> (i32, i32) {
    %c0_i32 = arith.constant 0 : i32
    %c0_i32_0 = arith.constant 0 : i32
    %c0_i32_1 = arith.constant 0 : i32
    return %c0_i32, %c0_i32_0 : i32, i32
  }
  func.func @transform_2(%arg0: i32) -> (i32, i32) {
    %c0_i32 = arith.constant 0 : i32
    %c0_i32_0 = arith.constant 0 : i32
    %c0_i32_1 = arith.constant 0 : i32
    return %c0_i32, %c0_i32_0 : i32, i32
  }
  func.func @transform_3(%arg0: i32) -> (i32, i32) {
    %c0_i32 = arith.constant 0 : i32
    %c0_i32_0 = arith.constant 0 : i32
    %c0_i32_1 = arith.constant 0 : i32
    return %c0_i32, %c0_i32_0 : i32, i32
  }
  func.func @transform_4(%arg0: i32) -> (i32, i32) {
    %c0_i32 = arith.constant 0 : i32
    %c0_i32_0 = arith.constant 0 : i32
    %c0_i32_1 = arith.constant 0 : i32
    return %c0_i32, %c0_i32_0 : i32, i32
  }
  func.func @transform_5(%arg0: i32) -> (i32, i32) {
    %c0_i32 = arith.constant 0 : i32
    %c0_i32_0 = arith.constant 0 : i32
    %c0_i32_1 = arith.constant 0 : i32
    return %c0_i32, %c0_i32_0 : i32, i32
  }
}

</mosaic_0001>

<bundles_post_ra>
// kernel: dense_block_fused.1
= control target key start
LH: loop header
LB: loop body
LE: loop exit
PB: predicated region body
PF: predicated region fallthrough
CT: control target
= control target key end

     0   :  { %v926_v2 = vmov 0   ;;  %v927_v10 = vmov 1   ;;  %s928_s23 = smov 1   ;;  %v929_v18 = vmov 0.0|0.0   ;;  %s930_s24 = smov 4   ;;  %vm934_vm0 = vmmov 0   ;;  %s1250_s0 = inlined_call_operand.vmem [shape: f32[8,128], index: 0, kind: input, shape index: {}]   ;;  %s1251_s5 = inlined_call_operand.vmem [shape: f32[32,128], index: 5, kind: output, shape index: {}]   ;;  %s1252_s1 = inlined_call_operand.vmem [shape: f32[32,6], index: 1, kind: input, shape index: {}]   ;;  %s1253_s2 = inlined_call_operand.vmem [shape: f32[8,72], index: 2, kind: input, shape index: {}]   ;;  %s1254_s3 = inlined_call_operand.vmem [shape: f32[8,144], index: 3, kind: input, shape index: {}]   ;;  %s1255_s4 = inlined_call_operand.vmem [shape: f32[8,216], index: 4, kind: input, shape index: {}]  }
   0x1   :  { %v976_v0 = vld [vmem:[%s1250_s0] sm:$0xff]  ;;  %905 = vset.pattern.permute.xlu1 %v926_v2  ;;  %906 = vset.pattern.permute.xlu0 %v927_v10  ;;  %s931_s25 = smov 3   ;;  %s932_s26 = smov 2   ;;  %v935_v23 = vmov 0.0   ;;  %v20_v24 = vlaneseq  ;;  %vm160_vm9 = vcmask 588800   ;;  %vm387_vm10 = vcmask 130048  }
   0x2   :  { %83 = vst [vmem:[%s1251_s5] sm:$0xff] %v976_v0  ;;  %86 = vadd.xlane.f32.xlu0 %v976_v0  ;;  %v985_v1 = vmul.f32 %v976_v0, %v976_v0  ;;  %v991_v11 = vld [vmem:[%s1252_s1] sm:$0xff]  ;;  %810 = vmatprep.subr.bf16.mxu1 %v929_v18  ;;  %s933_s27 = smov 127   ;;  %s936_s28 = smov 126   ;;  %vm689_vm11 = vcmask 719872  }
   0x3   :  { %849 = vmatprep.subr.bf16.mxu0 %v929_v18  ;;  %807 = vmatprep.mubr.msk.f32.mxu1 %vm934_vm0, %v935_v23  ;;  %s937_s29 = smov 125   ;;  %s938_s30 = smov 124   ;;  %v21_v25 = vand.u32 127, %v20_v24  ;;  %v150_v63 = vld [vmem:[%s1253_s2] sm:$0xff] }
   0x5   :  { %v26_v26 = vand.u32 63, %v21_v25 }
   0x6   :  { %90 = vadd.xlane.f32.xlu0 %v985_v1 }
   0x7   :  { %v34_v27 = vadd.s32 4294967292, %v26_v26  ;;  %v40_v28 = vadd.s32 4294967293, %v26_v26  ;;  %v46_v32 = vadd.s32 4294967294, %v26_v26  ;;  %v52_v33 = vadd.s32 4294967295, %v26_v26 }
   0x8   :  { %v58_v38 = vadd.s32 1, %v26_v26  ;;  %v64_v47 = vadd.s32 2, %v26_v26  ;;  %v70_v48 = vadd.s32 3, %v26_v26  ;;  %v76_v53 = vadd.s32 4, %v26_v26  ;;  %v1064_v26 = vld [vmem:[%s1252_s1 + $0x8] sm:$0xff] }
   0x9   :  { %vm35_vm1 = vcmp.ge.s32.totalorder %v34_v27, 0  ;;  %vm41_vm2 = vcmp.ge.s32.totalorder %v40_v28, 0  ;;  %vm47_vm3 = vcmp.ge.s32.totalorder %v46_v32, 0  ;;  %vm53_vm4 = vcmp.ge.s32.totalorder %v52_v33, 0 }
   0xa   :  { %v1011_v30 = vsel %vm35_vm1, 1.0, %v935_v23  ;;  %v1014_v31 = vsel %vm41_vm2, 1.0, %v935_v23  ;;  %v1019_v40 = vsel %vm47_vm3, 1.0, %v935_v23  ;;  %v1022_v41 = vsel %vm53_vm4, 1.0, %v935_v23 }
   0xb   :  { %vm60_vm5 = vcmp.lt.s32.totalorder %v58_v38, 64  ;;  %vm66_vm6 = vcmp.lt.s32.totalorder %v64_v47, 64  ;;  %vm72_vm7 = vcmp.lt.s32.totalorder %v70_v48, 64  ;;  %vm78_vm8 = vcmp.lt.s32.totalorder %v76_v53, 64 }
   0xc   :  { %v1028_v45 = vsel %vm60_vm5, 1.0, %v935_v23  ;;  %v1033_v54 = vsel %vm66_vm6, 1.0, %v935_v23  ;;  %v1036_v55 = vsel %vm72_vm7, 1.0, %v935_v23  ;;  %v1042_v60 = vsel %vm78_vm8, 1.0, %v935_v23 }
  0x8f   :  { %v87_v3 = vpop.xlane.xlu0 %86 }
  0x90   :  { %v88_v4 = vmul.f32 0.0078125, %v87_v3 }
  0x92   :  { %v93_v6 = vmul.f32 %v88_v4, %v88_v4 }
  0x93   :  { %v91_v5 = vpop.xlane.xlu0 %90 }
  0x94   :  { %v92_v7 = vmul.f32 0.0078125, %v91_v5 }
  0x96   :  { %v94_v8 = vsub.f32 %v92_v7, %v93_v6 }
  0x98   :  { %v95_v9 = vadd.f32 1e-05, %v94_v8 }
  0x9a   :  { %914 = vrsqrt.f32 %v95_v9 }
  0xa4   :  { %v915_v12 = vpop.eup %914 }
  0xa5   :  { %v97_v13 = vmul.f32 %v915_v12, %v991_v11 }
  0xa7   :  { %v98_v14 = vmul.f32 %v97_v13, %v88_v4 }
  0xa9   :  { %100 = vrot.lane.b32.xlu1 %v98_v14, %s928_s23 }
  0xad   :  { %106 = vperm.xlu1 %905, %v97_v13  }
 0x11b   :  { %v101_v15 = vpop.permute.xlu1 %100 }
 0x11c   :  { %v103_v16 = vsub.f32 %v991_v11, %v101_v15 }
 0x11e   :  { %112 = vperm.xlu0 %906, %v103_v16   ;;  %v939_v16 = vmov 2  }
 0x11f   :  { %907 = vset.pattern.permute.xlu1 %v939_v16 }
 0x122   :  { %908 = vset.pattern.permute.xlu0 %v939_v16 }
 0x12c   :  { %v107_v17 = vpop.permute.xlu1 %106 }
 0x12d   :  { %v109_v19 = vmul.f32 %v107_v17, %v976_v0 }
 0x19d   :  { %v113_v20 = vpop.permute.xlu0 %112 }
 0x19e   :  { %v115_v21 = vadd.f32 %v113_v20, %v109_v19 }
 0x1a0   :  { %v116_v22 = vmax.f32 %v115_v21, 0.0 }
 0x1a2   :  { %117 = vrot.lane.b32.xlu1 %v116_v22, %s930_s24 }
 0x1a6   :  { %121 = vrot.lane.b32.xlu1 %v116_v22, %s931_s25 }
 0x1aa   :  { %125 = vrot.lane.b32.xlu1 %v116_v22, %s932_s26 }
 0x1ae   :  { %129 = vrot.lane.b32.xlu1 %v116_v22, %s928_s23 }
 0x1b2   :  { %134 = vrot.lane.b32.xlu1 %v116_v22, %s933_s27 }
 0x1b6   :  { %138 = vrot.lane.b32.xlu1 %v116_v22, %s936_s28 }
 0x1ba   :  { %142 = vrot.lane.b32.xlu1 %v116_v22, %s937_s29 }
 0x1be   :  { %146 = vrot.lane.b32.xlu1 %v116_v22, %s938_s30 }
 0x1e2   :  { %239 = vadd.xlane.f32.xlu1 %v976_v0 }
 0x1e6   :  { %247 = vadd.xlane.f32.xlu1 %v985_v1 }
 0x214   :  { %v118_v29 = vpop.permute.xlu1 %117 }
 0x215   :  { %v119_v35 = vmul.f32 %v1011_v30, %v118_v29 }
 0x218   :  { %v122_v34 = vpop.permute.xlu1 %121 }
 0x219   :  { %v123_v36 = vmul.f32 %v1014_v31, %v122_v34  ;;  %v940_v34 = vmov 3  }
 0x21b   :  { %v811_v37 = vpack.c.bf16 %v123_v36, %v119_v35 }
 0x21c   :  { %v126_v39 = vpop.permute.xlu1 %125 }
 0x21d   :  { %812 = vmatpush3.bf16.msra.mxu1 %v811_v37  ;;  %v127_v43 = vmul.f32 %v1019_v40, %v126_v39 }
 0x21e   :  { %813 = vmatprep.subr.bf16.mxu1 %v929_v18 }
 0x220   :  { %v130_v42 = vpop.permute.xlu1 %129 }
 0x221   :  { %v131_v44 = vmul.f32 %v1022_v41, %v130_v42 }
 0x223   :  { %v814_v46 = vpack.c.bf16 %v131_v44, %v127_v43 }
 0x224   :  { %v135_v49 = vpop.permute.xlu1 %134 }
 0x225   :  { %v136_v50 = vmul.f32 %v1028_v45, %v135_v49  ;;  %815 = vmatpush3.bf16.msra.mxu1 %v814_v46 }
 0x226   :  { %816 = vmatprep.subr.bf16.mxu1 %v929_v18 }
 0x227   :  { %v817_v51 = vpack.c.bf16 %v136_v50, %v116_v22 }
 0x228   :  { %v139_v52 = vpop.permute.xlu1 %138 }
 0x229   :  { %818 = vmatpush3.bf16.msra.mxu1 %v817_v51  ;;  %v140_v57 = vmul.f32 %v1033_v54, %v139_v52 }
 0x22a   :  { %819 = vmatprep.subr.bf16.mxu1 %v929_v18 }
 0x22c   :  { %v143_v56 = vpop.permute.xlu1 %142 }
 0x22d   :  { %v144_v58 = vmul.f32 %v1036_v55, %v143_v56 }
 0x22f   :  { %v820_v59 = vpack.c.bf16 %v144_v58, %v140_v57 }
 0x230   :  { %v147_v61 = vpop.permute.xlu1 %146 }
 0x231   :  { %821 = vmatpush3.bf16.msra.mxu1 %v820_v59  ;;  %v148_v62 = vmul.f32 %v1042_v60, %v147_v61 }
 0x232   :  { %805 = vmatprep.subr.mxu1 %v935_v23 }
 0x235   :  { %806 = vmatpush3.msra.mxu1 %v148_v62 }
 0x236   :  { %808 = vmatmul.mubr.msk.f32.vlgmr.msra.gmra.mrb[0].mxu1 %vm160_vm9, %v150_v63  ;;  %822 = vmatprep.subr.bf16.mxu1 %v929_v18 }
 0x26f   :  { %v240_v2 = vpop.xlane.xlu1 %239 }
 0x270   :  { %v243_v3 = vmul.f32 0.0078125, %v240_v2 }
 0x272   :  { %v253_v5 = vmul.f32 %v243_v3, %v243_v3 }
 0x273   :  { %v248_v4 = vpop.xlane.xlu1 %247 }
 0x274   :  { %v251_v6 = vmul.f32 0.0078125, %v248_v4 }
 0x276   :  { %v255_v7 = vsub.f32 %v251_v6, %v253_v5 }
 0x278   :  { %v257_v8 = vadd.f32 1e-05, %v255_v7 }
 0x27a   :  { %916 = vrsqrt.f32 %v257_v8 }
 0x284   :  { %v917_v13 = vpop.eup %916 }
 0x285   :  { %v261_v14 = vmul.f32 %v917_v13, %v991_v11 }
 0x287   :  { %v263_v15 = vmul.f32 %v261_v14, %v243_v3 }
 0x309   :  { %v1050_v9 = vpop.f32.mrb[0].mxu1 }
 0x30a   :  { %234 = vst [vmem:[%s1251_s5 + $0x8] sm:$0xff] %v1050_v9  ;;  %v809_v10 = vpop.f32.mrb[1].mxu1  ;;  %241 = vadd.xlane.f32.xlu0 %v1050_v9  ;;  %v246_v12 = vmul.f32 %v1050_v9, %v1050_v9 }
 0x30c   :  { %249 = vadd.xlane.f32.xlu1 %v246_v12 }
 0x320   :  { %267 = vrot.lane.b32.xlu0 %v263_v15, %s928_s23 }
 0x397   :  { %v242_v17 = vpop.xlane.xlu0 %241 }
 0x398   :  { %v244_v19 = vmul.f32 0.0078125, %v242_v17 }
 0x399   :  { %v250_v20 = vpop.xlane.xlu1 %249 }
 0x39a   :  { %v254_v21 = vmul.f32 %v244_v19, %v244_v19  ;;  %v252_v22 = vmul.f32 0.0078125, %v250_v20 }
 0x39b   :  { %v268_v32 = vpop.permute.xlu0 %267 }
 0x39c   :  { %v256_v24 = vsub.f32 %v252_v22, %v254_v21  ;;  %v273_v33 = vsub.f32 %v991_v11, %v268_v32 }
 0x39e   :  { %v258_v25 = vadd.f32 1e-05, %v256_v24 }
 0x3a0   :  { %918 = vrsqrt.f32 %v258_v25 }
 0x3aa   :  { %v919_v27 = vpop.eup %918 }
 0x3ab   :  { %v262_v28 = vmul.f32 %v919_v27, %v1064_v26 }
 0x3ad   :  { %282 = vperm.xlu0 %908, %v262_v28   ;;  %v264_v29 = vmul.f32 %v262_v28, %v244_v19 }
 0x3af   :  { %269 = vrot.lane.b32.xlu1 %v264_v29, %s928_s23 }
 0x3b3   :  { %277 = vperm.xlu1 %907, %v261_v14  }
 0x3b7   :  { %909 = vset.pattern.permute.xlu1 %v940_v34 }
 0x3b8   :  { %289 = vperm.xlu1 %909, %v273_v33  }
 0x421   :  { %v270_v35 = vpop.permute.xlu1 %269 }
 0x422   :  { %v274_v36 = vsub.f32 %v1064_v26, %v270_v35 }
 0x424   :  { %294 = vperm.xlu1 %909, %v274_v36  }
 0x42c   :  { %v283_v44 = vpop.permute.xlu0 %282 }
 0x42d   :  { %v286_v46 = vmul.f32 %v283_v44, %v1050_v9 }
 0x432   :  { %v278_v37 = vpop.permute.xlu1 %277 }
 0x433   :  { %v285_v38 = vmul.f32 %v278_v37, %v976_v0 }
 0x437   :  { %v290_v39 = vpop.permute.xlu1 %289 }
 0x438   :  { %v297_v42 = vadd.f32 %v290_v39, %v285_v38  ;;  %v367_v39 = vld [vmem:[%s1254_s3] sm:$0xff] }
 0x43a   :  { %v1071_v43 = vmax.f32 %v297_v42, 0.0  ;;  %v941_v42 = vmov 4  }
 0x43b   :  { %911 = vset.pattern.permute.xlu0 %v941_v42  ;;  %910 = vset.pattern.permute.xlu1 %v941_v42 }
 0x43c   :  { %301 = vrot.lane.b32.xlu0 %v1071_v43, %s930_s24 }
 0x440   :  { %309 = vrot.lane.b32.xlu0 %v1071_v43, %s931_s25 }
 0x444   :  { %317 = vrot.lane.b32.xlu0 %v1071_v43, %s932_s26 }
 0x448   :  { %325 = vrot.lane.b32.xlu0 %v1071_v43, %s928_s23 }
 0x44c   :  { %335 = vrot.lane.b32.xlu0 %v1071_v43, %s933_s27 }
 0x450   :  { %343 = vrot.lane.b32.xlu0 %v1071_v43, %s936_s28 }
 0x454   :  { %351 = vrot.lane.b32.xlu0 %v1071_v43, %s937_s29 }
 0x458   :  { %359 = vrot.lane.b32.xlu0 %v1071_v43, %s938_s30 }
 0x477   :  { %468 = vadd.xlane.f32.xlu0 %v976_v0 }
 0x47b   :  { %480 = vadd.xlane.f32.xlu0 %v985_v1  ;;  %v368_v1 = vld [vmem:[%s1254_s3 + $0x8] sm:$0xff] }
 0x47c   :  { %777 = vmatprep.mubr.msk.f32.mxu1 %vm387_vm10, %v368_v1 }
 0x47f   :  { %482 = vadd.xlane.f32.xlu0 %v246_v12 }
 0x4a3   :  { %v295_v47 = vpop.permute.xlu1 %294 }
 0x4a4   :  { %v298_v48 = vadd.f32 %v295_v47, %v286_v46 }
 0x4a6   :  { %v300_v49 = vmax.f32 %v298_v48, 0.0 }
 0x4a8   :  { %303 = vrot.lane.b32.xlu1 %v300_v49, %s930_s24  ;;  %v835_v17 = vpack.c.bf16 %v300_v49, %v1071_v43 }
 0x4ac   :  { %311 = vrot.lane.b32.xlu1 %v300_v49, %s931_s25 }
 0x4ae   :  { %v302_v50 = vpop.permute.xlu0 %301 }
 0x4af   :  { %v305_v56 = vmul.f32 %v1011_v30, %v302_v50 }
 0x4b0   :  { %319 = vrot.lane.b32.xlu1 %v300_v49, %s932_s26 }
 0x4b2   :  { %v310_v51 = vpop.permute.xlu0 %309 }
 0x4b3   :  { %v313_v61 = vmul.f32 %v1014_v31, %v310_v51 }
 0x4b4   :  { %327 = vrot.lane.b32.xlu1 %v300_v49, %s928_s23 }
 0x4b6   :  { %v318_v52 = vpop.permute.xlu0 %317 }
 0x4b7   :  { %v321_v4 = vmul.f32 %v1019_v40, %v318_v52 }
 0x4b8   :  { %337 = vrot.lane.b32.xlu1 %v300_v49, %s933_s27 }
 0x4ba   :  { %v326_v63 = vpop.permute.xlu0 %325 }
 0x4bb   :  { %v329_v10 = vmul.f32 %v1022_v41, %v326_v63 }
 0x4bc   :  { %345 = vrot.lane.b32.xlu1 %v300_v49, %s936_s28 }
 0x4be   :  { %v336_v7 = vpop.permute.xlu0 %335 }
 0x4bf   :  { %v339_v20 = vmul.f32 %v1028_v45, %v336_v7 }
 0x4c0   :  { %353 = vrot.lane.b32.xlu1 %v300_v49, %s937_s29 }
 0x4c2   :  { %v344_v15 = vpop.permute.xlu0 %343 }
 0x4c3   :  { %v347_v27 = vmul.f32 %v1033_v54, %v344_v15 }
 0x4c4   :  { %361 = vrot.lane.b32.xlu1 %v300_v49, %s938_s30 }
 0x4c6   :  { %v352_v24 = vpop.permute.xlu0 %351 }
 0x4c7   :  { %v355_v33 = vmul.f32 %v1036_v55, %v352_v24 }
 0x4ca   :  { %v360_v34 = vpop.permute.xlu0 %359 }
 0x4cb   :  { %v363_v37 = vmul.f32 %v1042_v60, %v360_v34 }
 0x4e8   :  { %470 = vadd.xlane.f32.xlu1 %v1050_v9 }
 0x504   :  { %v469_v43 = vpop.xlane.xlu0 %468 }
 0x505   :  { %v474_v44 = vmul.f32 0.0078125, %v469_v43 }
 0x507   :  { %v489_v47 = vmul.f32 %v474_v44, %v474_v44 }
 0x508   :  { %v481_v46 = vpop.xlane.xlu0 %480 }
 0x509   :  { %v486_v48 = vmul.f32 0.0078125, %v481_v46 }
 0x50b   :  { %v492_v1 = vsub.f32 %v486_v48, %v489_v47 }
 0x50c   :  { %v483_v52 = vpop.xlane.xlu0 %482 }
 0x50d   :  { %v495_v51 = vadd.f32 1e-05, %v492_v1 }
 0x50f   :  { %920 = vrsqrt.f32 %v495_v51 }
 0x519   :  { %v921_v63 = vpop.eup %920 }
 0x51a   :  { %v304_v53 = vpop.permute.xlu1 %303 }
 0x51b   :  { %v306_v57 = vmul.f32 %v1011_v30, %v304_v53 }
 0x51d   :  { %v823_v58 = vpack.c.bf16 %v306_v57, %v305_v56  ;;  %v487_v56 = vmul.f32 0.0078125, %v483_v52 }
 0x51e   :  { %v312_v59 = vpop.permute.xlu1 %311 }
 0x51f   :  { %v314_v62 = vmul.f32 %v1014_v31, %v312_v59  ;;  %824 = vmatpush1.bf16.msra.mxu1 %v823_v58 }
 0x520   :  { %825 = vmatprep.subr.bf16.mxu1 %v929_v18 }
 0x521   :  { %v826_v2 = vpack.c.bf16 %v314_v62, %v313_v61 }
 0x522   :  { %v320_v3 = vpop.permute.xlu1 %319 }
 0x523   :  { %v322_v5 = vmul.f32 %v1019_v40, %v320_v3  ;;  %827 = vmatpush1.bf16.msra.mxu1 %v826_v2  ;;  %v501_v2 = vmul.f32 %v921_v63, %v991_v11 }
 0x524   :  { %828 = vmatprep.subr.bf16.mxu1 %v929_v18 }
 0x525   :  { %v829_v6 = vpack.c.bf16 %v322_v5, %v321_v4  ;;  %v504_v3 = vmul.f32 %v501_v2, %v474_v44 }
 0x526   :  { %v328_v8 = vpop.permute.xlu1 %327 }
 0x527   :  { %v330_v12 = vmul.f32 %v1022_v41, %v328_v8  ;;  %830 = vmatpush1.bf16.msra.mxu1 %v829_v6 }
 0x528   :  { %831 = vmatprep.subr.bf16.mxu1 %v929_v18 }
 0x529   :  { %v832_v13 = vpack.c.bf16 %v330_v12, %v329_v10 }
 0x52a   :  { %v338_v14 = vpop.permute.xlu1 %337 }
 0x52b   :  { %833 = vmatpush1.bf16.msra.mxu1 %v832_v13  ;;  %v340_v16 = vmul.f32 %v1028_v45, %v338_v14 }
 0x52c   :  { %834 = vmatprep.subr.bf16.mxu1 %v929_v18 }
 0x52d   :  { %v838_v21 = vpack.c.bf16 %v340_v16, %v339_v20  ;;  %v467_v16 = vld [vmem:[%s1252_s1 + $0x10] sm:$0xff] }
 0x52e   :  { %v346_v19 = vpop.permute.xlu1 %345 }
 0x52f   :  { %836 = vmatpush1.bf16.msra.mxu1 %v835_v17  ;;  %v348_v22 = vmul.f32 %v1033_v54, %v346_v19 }
 0x530   :  { %837 = vmatprep.subr.bf16.mxu1 %v929_v18 }
 0x531   :  { %v841_v28 = vpack.c.bf16 %v348_v22, %v347_v27  ;;  %v942_v22 = vmov 5  }
 0x532   :  { %v354_v25 = vpop.permute.xlu1 %353 }
 0x533   :  { %839 = vmatpush1.bf16.msra.mxu1 %v838_v21  ;;  %v356_v29 = vmul.f32 %v1036_v55, %v354_v25 }
 0x534   :  { %840 = vmatprep.subr.bf16.mxu1 %v929_v18 }
 0x535   :  { %v844_v35 = vpack.c.bf16 %v356_v29, %v355_v33 }
 0x536   :  { %v362_v32 = vpop.permute.xlu1 %361 }
 0x537   :  { %842 = vmatpush1.bf16.msra.mxu1 %v841_v28  ;;  %v364_v36 = vmul.f32 %v1042_v60, %v362_v32 }
 0x538   :  { %843 = vmatprep.subr.bf16.mxu1 %v929_v18 }
 0x539   :  { %v847_v38 = vpack.c.bf16 %v364_v36, %v363_v37 }
 0x53b   :  { %845 = vmatpush1.bf16.msra.mxu1 %v844_v35 }
 0x53c   :  { %846 = vmatprep.subr.bf16.mxu1 %v929_v18 }
 0x53f   :  { %848 = vmatpush1.bf16.msra.mxu1 %v847_v38 }
 0x542   :  { %456 = vmatmul.mubr.f32.vlgmr.msra.gmra.mrb[2].mxu1 %v367_v39 }
 0x575   :  { %v471_v49 = vpop.xlane.xlu1 %470 }
 0x576   :  { %v475_v50 = vmul.f32 0.0078125, %v471_v49 }
 0x578   :  { %v490_v53 = vmul.f32 %v475_v50, %v475_v50 }
 0x57a   :  { %v493_v57 = vsub.f32 %v487_v56, %v490_v53 }
 0x57c   :  { %v496_v62 = vadd.f32 1e-05, %v493_v57 }
 0x57e   :  { %922 = vrsqrt.f32 %v496_v62 }
 0x588   :  { %v923_v4 = vpop.eup %922 }
 0x589   :  { %v502_v5 = vmul.f32 %v923_v4, %v1064_v26 }
 0x58b   :  { %v505_v6 = vmul.f32 %v502_v5, %v475_v50  ;;  %v661_v50 = vld [vmem:[%s1255_s4 + $0x8] sm:$0xff] }
 0x58c   :  { %778 = vmatprep.mubr.msk.f32.mxu0 %vm689_vm11, %v661_v50 }
 0x615   :  { %v457_v58 = vpop.f32.mrb[2].mxu1 }
 0x616   :  { %461 = vst [vmem:[%s1251_s5 + $0x10] sm:$0xff] %v457_v58  ;;  %v459_v59 = vpop.f32.mrb[3].mxu1  ;;  %472 = vadd.xlane.f32.xlu1 %v457_v58  ;;  %v479_v61 = vmul.f32 %v457_v58, %v457_v58 }
 0x618   :  { %484 = vadd.xlane.f32.xlu0 %v479_v61 }
 0x627   :  { %510 = vrot.lane.b32.xlu1 %v504_v3, %s928_s23 }
 0x62e   :  { %512 = vrot.lane.b32.xlu0 %v505_v6, %s928_s23 }
 0x632   :  { %529 = vperm.xlu0 %911, %v502_v5  }
 0x6a3   :  { %v473_v7 = vpop.xlane.xlu1 %472 }
 0x6a4   :  { %v476_v8 = vmul.f32 0.0078125, %v473_v7 }
 0x6a5   :  { %v485_v10 = vpop.xlane.xlu0 %484 }
 0x6a6   :  { %v491_v12 = vmul.f32 %v476_v8, %v476_v8  ;;  %v488_v13 = vmul.f32 0.0078125, %v485_v10 }
 0x6a7   :  { %v511_v21 = vpop.permute.xlu1 %510 }
 0x6a8   :  { %v494_v14 = vsub.f32 %v488_v13, %v491_v12  ;;  %v519_v24 = vsub.f32 %v991_v11, %v511_v21 }
 0x6a9   :  { %v513_v25 = vpop.permute.xlu0 %512 }
 0x6aa   :  { %v497_v15 = vadd.f32 1e-05, %v494_v14  ;;  %v520_v27 = vsub.f32 %v1064_v26, %v513_v25 }
 0x6ac   :  { %924 = vrsqrt.f32 %v497_v15 }
 0x6b1   :  { %v530_v34 = vpop.permute.xlu0 %529 }
 0x6b2   :  { %v538_v37 = vmul.f32 %v530_v34, %v1050_v9 }
 0x6b6   :  { %v925_v17 = vpop.eup %924 }
 0x6b7   :  { %v503_v19 = vmul.f32 %v925_v17, %v467_v16 }
 0x6b9   :  { %534 = vperm.xlu0 %911, %v503_v19   ;;  %v506_v20 = vmul.f32 %v503_v19, %v476_v8 }
 0x6bb   :  { %514 = vrot.lane.b32.xlu1 %v506_v20, %s928_s23 }
 0x6bd   :  { %913 = vset.pattern.permute.xlu0 %v942_v22 }
 0x6bf   :  { %524 = vperm.xlu1 %910, %v501_v2  }
 0x6c3   :  { %912 = vset.pattern.permute.xlu1 %v942_v22 }
 0x6c4   :  { %542 = vperm.xlu1 %912, %v519_v24  }
 0x6c8   :  { %547 = vperm.xlu1 %912, %v520_v27  }
 0x72d   :  { %v515_v28 = vpop.permute.xlu1 %514 }
 0x72e   :  { %v521_v29 = vsub.f32 %v467_v16, %v515_v28 }
 0x730   :  { %552 = vperm.xlu1 %912, %v521_v29  }
 0x73e   :  { %v525_v32 = vpop.permute.xlu1 %524 }
 0x73f   :  { %v537_v33 = vmul.f32 %v525_v32, %v976_v0  ;;  %v535_v0 = vpop.permute.xlu0 %534 }
 0x740   :  { %v539_v42 = vmul.f32 %v535_v0, %v457_v58 }
 0x743   :  { %v543_v35 = vpop.permute.xlu1 %542 }
 0x744   :  { %v555_v36 = vadd.f32 %v543_v35, %v537_v33 }
 0x746   :  { %v1147_v38 = vmax.f32 %v555_v36, 0.0 }
 0x747   :  { %v548_v11 = vpop.permute.xlu1 %547 }
 0x748   :  { %v556_v39 = vadd.f32 %v548_v11, %v538_v37  ;;  %561 = vrot.lane.b32.xlu0 %v1147_v38, %s930_s24 }
 0x74a   :  { %v1151_v26 = vmax.f32 %v556_v39, 0.0 }
 0x74c   :  { %563 = vrot.lane.b32.xlu1 %v1151_v26, %s930_s24  ;;  %v868_v20 = vpack.c.bf16 %v1151_v26, %v1147_v38 }
 0x750   :  { %573 = vrot.lane.b32.xlu1 %v1147_v38, %s931_s25 }
 0x7af   :  { %v553_v43 = vpop.permute.xlu1 %552 }
 0x7b0   :  { %v557_v44 = vadd.f32 %v553_v43, %v539_v42 }
 0x7b2   :  { %v1157_v9 = vmax.f32 %v557_v44, 0.0 }
 0x7b4   :  { %577 = vrot.lane.b32.xlu1 %v1157_v9, %s931_s25  ;;  %565 = vrot.lane.b32.xlu0 %v1157_v9, %s930_s24 }
 0x7b8   :  { %587 = vrot.lane.b32.xlu1 %v1151_v26, %s932_s26  ;;  %575 = vrot.lane.b32.xlu0 %v1151_v26, %s931_s25 }
 0x7ba   :  { %v562_v46 = vpop.permute.xlu0 %561 }
 0x7bb   :  { %v567_v48 = vmul.f32 %v1011_v30, %v562_v46 }
 0x7bc   :  { %597 = vrot.lane.b32.xlu1 %v1147_v38, %s928_s23  ;;  %585 = vrot.lane.b32.xlu0 %v1147_v38, %s932_s26 }
 0x7be   :  { %v564_v47 = vpop.permute.xlu1 %563 }
 0x7bf   :  { %v568_v49 = vmul.f32 %v1011_v30, %v564_v47 }
 0x7c0   :  { %601 = vrot.lane.b32.xlu1 %v1157_v9, %s928_s23  ;;  %589 = vrot.lane.b32.xlu0 %v1157_v9, %s932_s26 }
 0x7c1   :  { %v850_v1 = vpack.c.bf16 %v568_v49, %v567_v48 }
 0x7c2   :  { %v574_v51 = vpop.permute.xlu1 %573 }
 0x7c3   :  { %851 = vmatpush1.bf16.msra.mxu0 %v850_v1  ;;  %v579_v56 = vmul.f32 %v1014_v31, %v574_v51 }
 0x7c4   :  { %614 = vrot.lane.b32.xlu1 %v1151_v26, %s933_s27  ;;  %599 = vrot.lane.b32.xlu0 %v1151_v26, %s928_s23 }
 0x7c5   :  { %852 = vmatprep.subr.bf16.mxu0 %v929_v18 }
 0x7c8   :  { %624 = vrot.lane.b32.xlu1 %v1147_v38, %s936_s28  ;;  %612 = vrot.lane.b32.xlu0 %v1147_v38, %s933_s27 }
 0x7cc   :  { %628 = vrot.lane.b32.xlu1 %v1157_v9, %s936_s28  ;;  %616 = vrot.lane.b32.xlu0 %v1157_v9, %s933_s27 }
 0x7d0   :  { %638 = vrot.lane.b32.xlu1 %v1151_v26, %s937_s29  ;;  %626 = vrot.lane.b32.xlu0 %v1151_v26, %s936_s28 }
 0x7d4   :  { %648 = vrot.lane.b32.xlu1 %v1147_v38, %s938_s30  ;;  %636 = vrot.lane.b32.xlu0 %v1147_v38, %s937_s29 }
 0x7d8   :  { %652 = vrot.lane.b32.xlu1 %v1157_v9, %s938_s30  ;;  %640 = vrot.lane.b32.xlu0 %v1157_v9, %s937_s29 }
 0x7dc   :  { %650 = vrot.lane.b32.xlu0 %v1151_v26, %s938_s30 }
 0x826   :  { %v578_v52 = vpop.permute.xlu1 %577  ;;  %v566_v53 = vpop.permute.xlu0 %565 }
 0x827   :  { %v569_v57 = vmul.f32 %v1011_v30, %v566_v53  ;;  %v581_v62 = vmul.f32 %v1014_v31, %v578_v52 }
 0x829   :  { %v853_v58 = vpack.c.bf16 %v579_v56, %v569_v57 }
 0x82a   :  { %v588_v59 = vpop.permute.xlu1 %587  ;;  %v576_v61 = vpop.permute.xlu0 %575 }
 0x82b   :  { %v580_v63 = vmul.f32 %v1014_v31, %v576_v61  ;;  %854 = vmatpush1.bf16.msra.mxu0 %v853_v58  ;;  %v592_v5 = vmul.f32 %v1019_v40, %v588_v59 }
 0x82c   :  { %855 = vmatprep.subr.bf16.mxu0 %v929_v18 }
 0x82d   :  { %v856_v2 = vpack.c.bf16 %v581_v62, %v580_v63 }
 0x82e   :  { %v598_v3 = vpop.permute.xlu1 %597  ;;  %v586_v4 = vpop.permute.xlu0 %585 }
 0x82f   :  { %v591_v6 = vmul.f32 %v1019_v40, %v586_v4  ;;  %857 = vmatpush1.bf16.msra.mxu0 %v856_v2  ;;  %v603_v10 = vmul.f32 %v1022_v41, %v598_v3 }
 0x830   :  { %858 = vmatprep.subr.bf16.mxu0 %v929_v18 }
 0x831   :  { %v859_v30 = vpack.c.bf16 %v592_v5, %v591_v6 }
 0x832   :  { %v602_v7 = vpop.permute.xlu1 %601  ;;  %v590_v8 = vpop.permute.xlu0 %589 }
 0x833   :  { %v593_v31 = vmul.f32 %v1019_v40, %v590_v8  ;;  %860 = vmatpush1.bf16.msra.mxu0 %v859_v30  ;;  %v605_v14 = vmul.f32 %v1022_v41, %v602_v7 }
 0x834   :  { %861 = vmatprep.subr.bf16.mxu0 %v929_v18 }
 0x835   :  { %v862_v12 = vpack.c.bf16 %v603_v10, %v593_v31 }
 0x836   :  { %v600_v13 = vpop.permute.xlu0 %599  ;;  %v615_v16 = vpop.permute.xlu1 %614 }
 0x837   :  { %v604_v15 = vmul.f32 %v1022_v41, %v600_v13  ;;  %863 = vmatpush1.bf16.msra.mxu0 %v862_v12  ;;  %v619_v27 = vmul.f32 %v1028_v45, %v615_v16 }
 0x838   :  { %864 = vmatprep.subr.bf16.mxu0 %v929_v18 }
 0x839   :  { %v865_v17 = vpack.c.bf16 %v605_v14, %v604_v15 }
 0x83a   :  { %v613_v19 = vpop.permute.xlu0 %612  ;;  %v625_v21 = vpop.permute.xlu1 %624 }
 0x83b   :  { %866 = vmatpush1.bf16.msra.mxu0 %v865_v17  ;;  %v618_v40 = vmul.f32 %v1028_v45, %v613_v19  ;;  %v630_v34 = vmul.f32 %v1033_v54, %v625_v21 }
 0x83c   :  { %867 = vmatprep.subr.bf16.mxu0 %v929_v18 }
 0x83d   :  { %v871_v41 = vpack.c.bf16 %v618_v40, %v1157_v9 }
 0x83e   :  { %v617_v22 = vpop.permute.xlu0 %616  ;;  %v629_v28 = vpop.permute.xlu1 %628 }
 0x83f   :  { %869 = vmatpush1.bf16.msra.mxu0 %v868_v20  ;;  %v620_v24 = vmul.f32 %v1028_v45, %v617_v22  ;;  %v632_v45 = vmul.f32 %v1033_v54, %v629_v28 }
 0x840   :  { %870 = vmatprep.subr.bf16.mxu0 %v929_v18 }
 0x841   :  { %v874_v29 = vpack.c.bf16 %v620_v24, %v619_v27 }
 0x842   :  { %v627_v25 = vpop.permute.xlu0 %626  ;;  %v639_v37 = vpop.permute.xlu1 %638 }
 0x843   :  { %872 = vmatpush1.bf16.msra.mxu0 %v871_v41  ;;  %v631_v32 = vmul.f32 %v1033_v54, %v627_v25  ;;  %v643_v0 = vmul.f32 %v1036_v55, %v639_v37 }
 0x844   :  { %873 = vmatprep.subr.bf16.mxu0 %v929_v18 }
 0x845   :  { %v877_v35 = vpack.c.bf16 %v631_v32, %v630_v34 }
 0x846   :  { %v637_v33 = vpop.permute.xlu0 %636  ;;  %v649_v42 = vpop.permute.xlu1 %648 }
 0x847   :  { %875 = vmatpush1.bf16.msra.mxu0 %v874_v29  ;;  %v642_v36 = vmul.f32 %v1036_v55, %v637_v33  ;;  %v654_v9 = vmul.f32 %v1042_v60, %v649_v42 }
 0x848   :  { %876 = vmatprep.subr.bf16.mxu0 %v929_v18 }
 0x849   :  { %v880_v11 = vpack.c.bf16 %v642_v36, %v632_v45 }
 0x84a   :  { %v641_v38 = vpop.permute.xlu0 %640  ;;  %v653_v46 = vpop.permute.xlu1 %652 }
 0x84b   :  { %878 = vmatpush1.bf16.msra.mxu0 %v877_v35  ;;  %v644_v39 = vmul.f32 %v1036_v55, %v641_v38  ;;  %v656_v47 = vmul.f32 %v1042_v60, %v653_v46  ;;  %v660_v55 = vld [vmem:[%s1255_s4] sm:$0xff] }
 0x84c   :  { %879 = vmatprep.subr.bf16.mxu0 %v929_v18 }
 0x84d   :  { %v883_v43 = vpack.c.bf16 %v644_v39, %v643_v0 }
 0x84e   :  { %v651_v26 = vpop.permute.xlu0 %650 }
 0x84f   :  { %881 = vmatpush1.bf16.msra.mxu0 %v880_v11  ;;  %v655_v44 = vmul.f32 %v1042_v60, %v651_v26 }
 0x850   :  { %882 = vmatprep.subr.bf16.mxu0 %v929_v18 }
 0x851   :  { %v886_v54 = vpack.c.bf16 %v655_v44, %v654_v9 }
 0x853   :  { %884 = vmatpush1.bf16.msra.mxu0 %v883_v43 }
 0x854   :  { %885 = vmatprep.subr.bf16.mxu0 %v929_v18 }
 0x857   :  { %887 = vmatpush1.bf16.msra.mxu0 %v886_v54 }
 0x858   :  { %745 = vmatprep.subr.mxu0 %v935_v23 }
 0x85b   :  { %746 = vmatpush1.msra.mxu0 %v656_v47 }
 0x85c   :  { %758 = vmatmul.mubr.f32.vlgmr.msra.gmra.mrb[0].mxu0 %v660_v55 }
 0x92f   :  { %v759_v48 = vpop.f32.mrb[0].mxu0 }
 0x930   :  { %763 = vst [vmem:[%s1251_s5 + $0x18] sm:$0xff] %v759_v48  ;;  %v761_v49 = vpop.f32.mrb[1].mxu0 }

</bundles_post_ra>
